<compile_context>
chip_gen: v7x
topology: tpu7x:2x2x1
jax: 0.10.0
libtpu: 0.0.40
codegen_flags: <defaults>
</compile_context>

<pallas_src>
import numpy as np
import jax
import jax.numpy as jnp
from jax.experimental import pallas as pl
from jax.experimental.pallas import tpu as pltpu


def _round_up(x, m):
    return ((x + m - 1) // m) * m


_TARGET_LANES_PER_STEP = 1024   # aim for ~8 lane-vregs of output per grid step


# ----------------------------- Pallas kernel --------------------------------

def _make_conv_kernel(kh, kw, Wp, C_in, M_pad, G):
    """Per-grid-step kernel: in-VMEM im2col slab + one fused-K matmul."""
    taps = [(di, dj) for di in range(kh) for dj in range(kw)]

    def kernel(x_ref, w_ref, b_ref, o_ref, patch_ref):
        # x_ref    : (G, C_in, R_total)     bias-padded images, rows flattened on lanes
        # w_ref    : (C_out_pad, K)         folded weights, K = kh*kw*C_in
        # b_ref    : (C_out_pad, 1)         folded per-output-channel bias
        # o_ref    : (G, C_out_pad, M_pad)  transposed dense stride-1 output
        # patch_ref: (K, G*M_pad)           VMEM im2col slab (scratch)
        for g in range(G):
            for t, (di, dj) in enumerate(taps):
                off = di * Wp + dj                       # static flat tap offset
                patch_ref[t * C_in:(t + 1) * C_in,
                          g * M_pad:(g + 1) * M_pad] = x_ref[g, :, off:off + M_pad]
        # Single K = kh*kw*C_in matmul; no accumulator init/round trips.
        y = jnp.dot(w_ref[...], patch_ref[...],
                    preferred_element_type=jnp.float32) + b_ref[...]
        for g in range(G):
            o_ref[g] = y[:, g * M_pad:(g + 1) * M_pad].astype(o_ref.dtype)

    return kernel


# ------------------------------- wrapper -------------------------------------

def hebbian_conv2d_forward(x, weight, bias, sd, *, stride, padding):
    """HebbianConv2d forward (activation = Identity). NCHW in, NCHW out."""
    N, C_in, H, W = x.shape
    C_out, _, kh, kw = weight.shape
    sh, sw = stride
    ph, pw = padding
    eps = 0.001

    # ---- fold normalization into the weights (tiny, once per call) ----
    bias_c = bias.reshape(C_in).astype(jnp.float32)
    inv_sd = 1.0 / (sd.reshape(C_in).astype(jnp.float32) + eps)
    w_fold = weight.astype(jnp.float32) * inv_sd[None, :, None, None]
    b_out = -jnp.einsum("oikl,i->o", w_fold, bias_c)              # (C_out,)

    C_out_pad = _round_up(max(C_out, 1), 8)       # sublane-aligned, NOT 128-padded
    K = kh * kw * C_in
    # single 2-D weight buffer; K ordered (di, dj, ci) to match the in-kernel slab
    w_flat = jnp.transpose(w_fold, (0, 2, 3, 1)).reshape(C_out, K)
    w_flat = jnp.pad(w_flat, ((0, C_out_pad - C_out), (0, 0))).astype(x.dtype)
    b_pad = jnp.pad(b_out, (0, C_out_pad - C_out)).reshape(C_out_pad, 1)

    # ---- bias-valued spatial pad in the RAW domain (padded pixels normalize to 0) ----
    Hp, Wp = H + 2 * ph, W + 2 * pw
    if ph > 0 or pw > 0:
        pad_val = jnp.broadcast_to(
            bias_c.reshape(1, C_in, 1, 1).astype(x.dtype), (N, C_in, Hp, Wp))
        xp = jax.lax.dynamic_update_slice(pad_val, x, (0, 0, ph, pw))
    else:
        xp = x

    Ho_full = Hp - kh + 1             # dense stride-1 output rows
    M_img = Ho_full * Wp              # dense rows x full padded width (per image)
    M_pad = _round_up(M_img, 128)     # lane-dense output width per image

    # lane padding so every shifted tap slab stays in bounds (pad values discarded)
    R_total = _round_up((kh - 1) * Wp + (kw - 1) + M_pad, 128)
    x_flat = jnp.pad(xp.reshape(N, C_in, Hp * Wp),
                     ((0, 0), (0, 0), (0, R_total - Hp * Wp)))

    # ---- images per grid step: amortize per-step overhead, keep >=2 steps ----
    G = min(N, max(1, _TARGET_LANES_PER_STEP // M_pad))
    if N > 1:
        G = min(G, max(1, N // 2))    # keep >=2 parallel blocks for megacore
    while N % G != 0:
        G -= 1

    kernel = _make_conv_kernel(kh, kw, Wp, C_in, M_pad, G)
    out = pl.pallas_call(
        kernel,
        out_shape=jax.ShapeDtypeStruct((N, C_out_pad, M_pad), x.dtype),
        grid=(N // G,),
        in_specs=[
            pl.BlockSpec((G, C_in, R_total), lambda i: (i, 0, 0)),
            pl.BlockSpec((C_out_pad, K), lambda i: (0, 0)),
            pl.BlockSpec((C_out_pad, 1), lambda i: (0, 0)),
        ],
        out_specs=pl.BlockSpec((G, C_out_pad, M_pad), lambda i: (i, 0, 0)),
        scratch_shapes=[pltpu.VMEM((K, G * M_pad), x.dtype)],
        compiler_params=pltpu.CompilerParams(
            dimension_semantics=("parallel",),   # megacore split on v7x
        ),
    )(x_flat, w_flat, b_pad)

    # ---- slice the real output out of the dense stride-1 rows (tiny tensor) ----
    Ho = (H + 2 * ph - kh) // sh + 1
    Wo = (W + 2 * pw - kw) // sw + 1
    y = out[:, :C_out, :M_img].reshape(N, C_out, Ho_full, Wp)
    y = y[:, :, 0:(Ho - 1) * sh + 1:sh, 0:(Wo - 1) * sw + 1:sw]
    return y                                     # already NCHW, no final transpose


class HebbianConv2dPallas:
    """Forward-pass-only Pallas port of HebbianConv2d (activation = Identity)."""

    def __init__(self, in_channels, out_channels, kernel_size,
                 stride=1, padding=0, key=None):
        if isinstance(kernel_size, int):
            kernel_size = (kernel_size, kernel_size)
        if isinstance(stride, int):
            stride = (stride, stride)
        if isinstance(padding, int):
            padding = (padding, padding)
        self.in_channels = in_channels
        self.out_channels = out_channels
        self.kernel_size = kernel_size
        self.stride = stride
        self.padding = padding
        if key is None:
            key = jax.random.PRNGKey(0)
        weight_scale = 1.0 / np.sqrt(in_channels * kernel_size[0] * kernel_size[1])
        self.weight = (jax.random.normal(
            key, (out_channels, in_channels, kernel_size[0], kernel_size[1]),
            dtype=jnp.float32) * weight_scale)
        self.bias = jnp.zeros((1, in_channels, 1, 1), dtype=jnp.float32)
        self.sd = jnp.ones((1, in_channels, 1, 1), dtype=jnp.float32)
        self._fwd = jax.jit(hebbian_conv2d_forward,
                            static_argnames=("stride", "padding"))

    def __call__(self, x):
        return self._fwd(x, self.weight, self.bias, self.sd,
                         stride=self.stride, padding=self.padding)


# --------------------------------- main ---------------------------------------

if __name__ == "__main__":
    key = jax.random.PRNGKey(0)
    kx, kw_, kb, ks = jax.random.split(key, 4)

    N, C_in, H, W = 2, 4, 16, 16
    C_out, ksize, stride, padding = 8, 3, 1, 1

    x = jax.random.normal(kx, (N, C_in, H, W), dtype=jnp.float32)

    layer = HebbianConv2dPallas(C_in, C_out, ksize, stride=stride,
                                padding=padding, key=kw_)
    # non-trivial normalization buffers to exercise the folded-normalization path
    layer.bias = 0.3 * jax.random.normal(kb, (1, C_in, 1, 1), dtype=jnp.float32)
    layer.sd = 1.0 + 0.2 * jax.random.uniform(ks, (1, C_in, 1, 1), dtype=jnp.float32)

    y = jax.block_until_ready(layer(x))

    # Reference: normalize then XLA conv (matches the PyTorch forward).
    x_norm_ref = (x - layer.bias) / (layer.sd + 0.001)
    y_ref = jax.lax.conv_general_dilated(
        x_norm_ref, layer.weight,
        window_strides=layer.stride,
        padding=[(layer.padding[0], layer.padding[0]),
                 (layer.padding[1], layer.padding[1])],
        dimension_numbers=("NCHW", "OIHW", "NCHW"),
        precision=jax.lax.Precision.HIGHEST)
    assert y.shape == y_ref.shape == (N, C_out, H, W)
    np.testing.assert_allclose(np.asarray(y), np.asarray(y_ref),
                               rtol=1e-4, atol=1e-4)

    print("KERNEL_OK")
</pallas_src>

<mosaic_0001>
module attributes {stable_mosaic.version = 11 : i64} {
  func.func @kernel(%arg0: i32, %arg1: memref<1x4x512xf32, #tpu.memory_space<vmem>>, %arg2: memref<8x36xf32, #tpu.memory_space<vmem>>, %arg3: memref<8x1xf32, #tpu.memory_space<vmem>>, %arg4: memref<1x8x384xf32, #tpu.memory_space<vmem>>, %arg5: memref<36x384xf32, #tpu.memory_space<vmem>>) attributes {dimension_semantics = [#tpu.dimension_semantics<parallel>], iteration_bounds = array<i64: 2>, scalar_prefetch = 0 : i64, scratch_operands = 1 : i64, tpu.core_type = #tpu.core_type<tc>, window_params = [{transform_indices = @transform_0, window_bounds = array<i64: 1, 4, 512>}, {pipeline_mode = #tpu.pipeline_mode<synchronous>, transform_indices = @transform_1, window_bounds = array<i64: 8, 36>}, {pipeline_mode = #tpu.pipeline_mode<synchronous>, transform_indices = @transform_2, window_bounds = array<i64: 8, 1>}, {transform_indices = @transform_3, window_bounds = array<i64: 1, 8, 384>}]} {
    %c0 = arith.constant 0 : index
    %c0_0 = arith.constant 0 : index
    %c0_1 = arith.constant 0 : index
    %0 = vector.load %arg1[%c0, %c0_0, %c0_1] : memref<1x4x512xf32, #tpu.memory_space<vmem>>, vector<1x4x384xf32>
    %1 = vector.shape_cast %0 : vector<1x4x384xf32> to vector<4x384xf32>
    %c0_2 = arith.constant 0 : index
    %c0_3 = arith.constant 0 : index
    %2 = vector.load %arg5[%c0_2, %c0_3] : memref<36x384xf32, #tpu.memory_space<vmem>>, vector<4x384xf32>
    tpu.vector_store %arg5[%c0_2, %c0_3], %1 {strides = array<i32>} : memref<36x384xf32, #tpu.memory_space<vmem>>, vector<4x384xf32>,
    %c0_4 = arith.constant 0 : index
    %c0_5 = arith.constant 0 : index
    %c1 = arith.constant 1 : index
    %3 = vector.load %arg1[%c0_4, %c0_5, %c1] : memref<1x4x512xf32, #tpu.memory_space<vmem>>, vector<1x4x384xf32>
    %4 = vector.shape_cast %3 : vector<1x4x384xf32> to vector<4x384xf32>
    %c4 = arith.constant 4 : index
    %c0_6 = arith.constant 0 : index
    %5 = vector.load %arg5[%c4, %c0_6] : memref<36x384xf32, #tpu.memory_space<vmem>>, vector<4x384xf32>
    tpu.vector_store %arg5[%c4, %c0_6], %4 {strides = array<i32>} : memref<36x384xf32, #tpu.memory_space<vmem>>, vector<4x384xf32>,
    %c0_7 = arith.constant 0 : index
    %c0_8 = arith.constant 0 : index
    %c2 = arith.constant 2 : index
    %6 = vector.load %arg1[%c0_7, %c0_8, %c2] : memref<1x4x512xf32, #tpu.memory_space<vmem>>, vector<1x4x384xf32>
    %7 = vector.shape_cast %6 : vector<1x4x384xf32> to vector<4x384xf32>
    %c8 = arith.constant 8 : index
    %c0_9 = arith.constant 0 : index
    %8 = vector.load %arg5[%c8, %c0_9] : memref<36x384xf32, #tpu.memory_space<vmem>>, vector<4x384xf32>
    tpu.vector_store %arg5[%c8, %c0_9], %7 {strides = array<i32>} : memref<36x384xf32, #tpu.memory_space<vmem>>, vector<4x384xf32>,
    %c0_10 = arith.constant 0 : index
    %c0_11 = arith.constant 0 : index
    %c18 = arith.constant 18 : index
    %9 = vector.load %arg1[%c0_10, %c0_11, %c18] : memref<1x4x512xf32, #tpu.memory_space<vmem>>, vector<1x4x384xf32>
    %10 = vector.shape_cast %9 : vector<1x4x384xf32> to vector<4x384xf32>
    %c12 = arith.constant 12 : index
    %c0_12 = arith.constant 0 : index
    %11 = vector.load %arg5[%c12, %c0_12] : memref<36x384xf32, #tpu.memory_space<vmem>>, vector<4x384xf32>
    tpu.vector_store %arg5[%c12, %c0_12], %10 {strides = array<i32>} : memref<36x384xf32, #tpu.memory_space<vmem>>, vector<4x384xf32>,
    %c0_13 = arith.constant 0 : index
    %c0_14 = arith.constant 0 : index
    %c19 = arith.constant 19 : index
    %12 = vector.load %arg1[%c0_13, %c0_14, %c19] : memref<1x4x512xf32, #tpu.memory_space<vmem>>, vector<1x4x384xf32>
    %13 = vector.shape_cast %12 : vector<1x4x384xf32> to vector<4x384xf32>
    %c16 = arith.constant 16 : index
    %c0_15 = arith.constant 0 : index
    %14 = vector.load %arg5[%c16, %c0_15] : memref<36x384xf32, #tpu.memory_space<vmem>>, vector<4x384xf32>
    tpu.vector_store %arg5[%c16, %c0_15], %13 {strides = array<i32>} : memref<36x384xf32, #tpu.memory_space<vmem>>, vector<4x384xf32>,
    %c0_16 = arith.constant 0 : index
    %c0_17 = arith.constant 0 : index
    %c20 = arith.constant 20 : index
    %15 = vector.load %arg1[%c0_16, %c0_17, %c20] : memref<1x4x512xf32, #tpu.memory_space<vmem>>, vector<1x4x384xf32>
    %16 = vector.shape_cast %15 : vector<1x4x384xf32> to vector<4x384xf32>
    %c20_18 = arith.constant 20 : index
    %c0_19 = arith.constant 0 : index
    %17 = vector.load %arg5[%c20_18, %c0_19] : memref<36x384xf32, #tpu.memory_space<vmem>>, vector<4x384xf32>
    tpu.vector_store %arg5[%c20_18, %c0_19], %16 {strides = array<i32>} : memref<36x384xf32, #tpu.memory_space<vmem>>, vector<4x384xf32>,
    %c0_20 = arith.constant 0 : index
    %c0_21 = arith.constant 0 : index
    %c36 = arith.constant 36 : index
    %18 = vector.load %arg1[%c0_20, %c0_21, %c36] : memref<1x4x512xf32, #tpu.memory_space<vmem>>, vector<1x4x384xf32>
    %19 = vector.shape_cast %18 : vector<1x4x384xf32> to vector<4x384xf32>
    %c24 = arith.constant 24 : index
    %c0_22 = arith.constant 0 : index
    %20 = vector.load %arg5[%c24, %c0_22] : memref<36x384xf32, #tpu.memory_space<vmem>>, vector<4x384xf32>
    tpu.vector_store %arg5[%c24, %c0_22], %19 {strides = array<i32>} : memref<36x384xf32, #tpu.memory_space<vmem>>, vector<4x384xf32>,
    %c0_23 = arith.constant 0 : index
    %c0_24 = arith.constant 0 : index
    %c37 = arith.constant 37 : index
    %21 = vector.load %arg1[%c0_23, %c0_24, %c37] : memref<1x4x512xf32, #tpu.memory_space<vmem>>, vector<1x4x384xf32>
    %22 = vector.shape_cast %21 : vector<1x4x384xf32> to vector<4x384xf32>
    %c28 = arith.constant 28 : index
    %c0_25 = arith.constant 0 : index
    %23 = vector.load %arg5[%c28, %c0_25] : memref<36x384xf32, #tpu.memory_space<vmem>>, vector<4x384xf32>
    tpu.vector_store %arg5[%c28, %c0_25], %22 {strides = array<i32>} : memref<36x384xf32, #tpu.memory_space<vmem>>, vector<4x384xf32>,
    %c0_26 = arith.constant 0 : index
    %c0_27 = arith.constant 0 : index
    %c38 = arith.constant 38 : index
    %24 = vector.load %arg1[%c0_26, %c0_27, %c38] : memref<1x4x512xf32, #tpu.memory_space<vmem>>, vector<1x4x384xf32>
    %25 = vector.shape_cast %24 : vector<1x4x384xf32> to vector<4x384xf32>
    %c32 = arith.constant 32 : index
    %c0_28 = arith.constant 0 : index
    %26 = vector.load %arg5[%c32, %c0_28] : memref<36x384xf32, #tpu.memory_space<vmem>>, vector<4x384xf32>
    tpu.vector_store %arg5[%c32, %c0_28], %25 {strides = array<i32>} : memref<36x384xf32, #tpu.memory_space<vmem>>, vector<4x384xf32>,
    %c0_29 = arith.constant 0 : index
    %c0_30 = arith.constant 0 : index
    %27 = vector.load %arg2[%c0_29, %c0_30] : memref<8x36xf32, #tpu.memory_space<vmem>>, vector<8x36xf32>
    %c0_31 = arith.constant 0 : index
    %c0_32 = arith.constant 0 : index
    %28 = vector.load %arg5[%c0_31, %c0_32] : memref<36x384xf32, #tpu.memory_space<vmem>>, vector<36x384xf32>
    %cst = arith.constant dense<0.000000e+00> : vector<8x384xf32>
    %29 = tpu.matmul %27, %28, %cst {dimension_numbers = #tpu.dot_dimension_numbers<[1], [0], [0], [1], [0, 0, 1, 1], [], []>} : vector<8x36xf32>, vector<36x384xf32>, vector<8x384xf32> -> vector<8x384xf32>
    %c0_33 = arith.constant 0 : index
    %c0_34 = arith.constant 0 : index
    %30 = vector.load %arg3[%c0_33, %c0_34] : memref<8x1xf32, #tpu.memory_space<vmem>>, vector<8x1xf32>
    %31 = vector.broadcast %30 : vector<8x1xf32> to vector<8x384xf32>
    %32 = arith.addf %29, %31 : vector<8x384xf32>
    %c0_35 = arith.constant 0 : index
    %c0_36 = arith.constant 0 : index
    %c0_37 = arith.constant 0 : index
    %33 = vector.load %arg4[%c0_35, %c0_36, %c0_37] : memref<1x8x384xf32, #tpu.memory_space<vmem>>, vector<1x8x384xf32>
    %34 = vector.shape_cast %33 : vector<1x8x384xf32> to vector<8x384xf32>
    %35 = vector.shape_cast %32 : vector<8x384xf32> to vector<1x8x384xf32>
    tpu.vector_store %arg4[%c0_35, %c0_36, %c0_37], %35 {strides = array<i32>} : memref<1x8x384xf32, #tpu.memory_space<vmem>>, vector<1x8x384xf32>,
    return
  }
  func.func @transform_0(%arg0: i32) -> (i32, i32, i32) {
    %c0_i32 = arith.constant 0 : i32
    %c0_i32_0 = arith.constant 0 : i32
    %c0_i32_1 = arith.constant 0 : i32
    return %arg0, %c0_i32, %c0_i32_0 : i32, i32, i32
  }
  func.func @transform_1(%arg0: i32) -> (i32, i32) {
    %c0_i32 = arith.constant 0 : i32
    %c0_i32_0 = arith.constant 0 : i32
    %c0_i32_1 = arith.constant 0 : i32
    return %c0_i32, %c0_i32_0 : i32, i32
  }
  func.func @transform_2(%arg0: i32) -> (i32, i32) {
    %c0_i32 = arith.constant 0 : i32
    %c0_i32_0 = arith.constant 0 : i32
    %c0_i32_1 = arith.constant 0 : i32
    return %c0_i32, %c0_i32_0 : i32, i32
  }
  func.func @transform_3(%arg0: i32) -> (i32, i32, i32) {
    %c0_i32 = arith.constant 0 : i32
    %c0_i32_0 = arith.constant 0 : i32
    %c0_i32_1 = arith.constant 0 : i32
    return %arg0, %c0_i32, %c0_i32_0 : i32, i32, i32
  }
}

</mosaic_0001>

<bundles_post_ra>
// kernel: hebbian_conv2d_forward.1
= control target key start
LH: loop header
LB: loop body
LE: loop exit
PB: predicated region body
PF: predicated region fallthrough
CT: control target
= control target key end

     0   :  { %s721_s12 = smov 0   ;;  %s771_s0 = inlined_call_operand.vmem [shape: f32[2,4,512], index: 0, kind: input, shape index: {}]   ;;  %s772_s1 = inlined_call_operand.vmem [shape: f32[8,36], index: 1, kind: input, shape index: {}]   ;;  %s773_s2 = inlined_call_operand.vmem [shape: f32[8,1], index: 2, kind: input, shape index: {}]   ;;  %s774_s3 = inlined_call_operand.vmem [shape: f32[2,8,384], index: 3, kind: output, shape index: {}]  }
   0x1 LB: > { %s606_s13 = sadd.s32 4294967295, %s687_s12   ;;  %p610_p0 = scmp.ge.s32.totalorder %s687_s12, 1  ;;  %s687_s12 = sphi %s721_s12, %s13_s12  }
   0x2   : > { %p137_p1 = scmp.lt.s32.totalorder %s687_s12, 3 }
   0x4   : > { %p138_p2 = pnand %p610_p0, %p137_p1 }
   0x5   : > { %p161_p3 = scmp.lt.s32.totalorder (!%p138_p2), %s606_s13, 1  ;;  %s689_s18 = smov (!%p138_p2), 126   ;;  %v692_v7 = vmov (!%p138_p2), 0.0|0.0   ;;  %v697_v8 = vmov (!%p138_p2), 0.0   ;;  %vm699_vm0 = vmmov (!%p138_p2), 0   ;;  %v700_v9 = vmov (!%p138_p2), 0  }
   0x6   : > { %141 = sbr.rel (%p138_p2) target bundleno = 418 (0x1a2), region = 32  ;;  %s690_s19 = smov (!%p138_p2), 127   ;;  %649 = vmatprep.subr.bf16.mxu1 (!%p138_p2), %v692_v7  ;;  %471 = vmatprep.mubr.f32.mxu0 (!%p138_p2), %v697_v8  ;;  %v387_v10 = vld [vmem:[%s773_s2] sm:$0xff] (!%p138_p2)  ;;  %vm217_vm1 = vcmask (!%p138_p2), 1031168   ;;  %vm241_vm2 = vcmask (!%p138_p2), 900096   ;;  %vm193_vm3 = vcmask (!%p138_p2), 1039360  }
   0x7   : > { %s691_s20 = smov (!%p138_p2), 110   ;;  %s693_s21 = smov (!%p138_p2), 109   ;;  %638 = vmatprep.mubr.msk.f32.mxu1 (!%p138_p2), %vm699_vm0, %v697_v8  ;;  %676 = vset.pattern.permute.xlu0 (!%p138_p2), %v700_v9  ;;  %vm265_vm4 = vcmask (!%p138_p2), 891904   ;;  %vm289_vm5 = vcmask (!%p138_p2), 883712   ;;  %vm313_vm6 = vcmask (!%p138_p2), 752640   ;;  %vm337_vm7 = vcmask (!%p138_p2), 744448  }
   0x8   : > { %s694_s22 = smov (!%p138_p2), 108   ;;  %s695_s23 = smov (!%p138_p2), 92   ;;  %vm361_vm8 = vcmask (!%p138_p2), 736256   ;;  %vm397_vm9 = vcmask (!%p138_p2), 1043456   ;;  %vm393_vm10 = vcmask (!%p138_p2), 293888  }
   0x9   : > { %s696_s24 = smov (!%p138_p2), 91   ;;  %s698_s25 = smov (!%p138_p2), 90  }
   0xd   : > { %s776_s13 = smov (!%p161_p3, %s606_s13), 1 }
   0xe   : > { %s621_s14 = sshll.u32 %s776_s13, 4  ;;  %s655_s30 = smul.u32 24, %s776_s13 }
   0xf   : > { %s165_s17 = scalar_lea.vmem %s771_s0, %s621_s14 }
  0x10   : > { %v204_v0 = vld [vmem:[%s165_s17 + $0x8] sm:$0xff]  ;;  %v179_v1 = vld [vmem:[%s165_s17] sm:$0xff]  ;;  %s170_s6 = scalar_lea.vmem %s774_s3, %s655_s30 }
  0x11   : > { %213 = vrot.lane.b32.xlu1 %v204_v0, %s689_s18  ;;  %187 = vrot.lane.b32.xlu0 %v179_v1, %s690_s19  ;;  %v207_v2 = vcombine.high %v179_v1, %v179_v1  ;;  %176 = vst [vmem:[#allocation2] sm:$0xf] %v179_v1  ;;  %v172_v3 = vld [vmem:[%s165_s17 + $0x8] sm:$0xf]  ;;  %v232_v4 = vcombine.low %v204_v0, %v204_v0 }
  0x12   : > { %178 = vst [vmem:[#allocation2 + $0x10] sm:$0xf] %v172_v3  ;;  %v183_v5 = vcombine.low %v179_v1, %v179_v1  ;;  %v208_v6 = vcombine.high %v204_v0, %v204_v0 }
  0x13   : > { %177 = vst [vmem:[#allocation2 + $0x8] sm:$0xf] %v207_v2 }
  0x15   : > { %211 = vrot.lane.b32.xlu1 %v207_v2, %s689_s18  ;;  %235 = vrot.lane.b32.xlu0 %v179_v1, %s691_s20 }
  0x19   : > { %237 = vrot.lane.b32.xlu1 %v232_v4, %s691_s20  ;;  %189 = vrot.lane.b32.xlu0 %v232_v4, %s690_s19 }
  0x1d   : > { %209 = vrot.lane.b32.xlu1 %v179_v1, %s689_s18  ;;  %185 = vrot.lane.b32.xlu0 %v183_v5, %s690_s19 }
  0x21   : > { %191 = vrot.lane.b32.xlu1 %v204_v0, %s690_s19  ;;  %233 = vrot.lane.b32.xlu0 %v183_v5, %s691_s20 }
  0x25   : > { %239 = vrot.lane.b32.xlu1 %v204_v0, %s691_s20  ;;  %215 = vrot.lane.b32.xlu0 %v208_v6, %s689_s18 }
  0x29   : > { %261 = vrot.lane.b32.xlu1 %v204_v0, %s693_s21  ;;  %259 = vrot.lane.b32.xlu0 %v207_v2, %s693_s21 }
  0x2d   : > { %285 = vrot.lane.b32.xlu1 %v232_v4, %s694_s22  ;;  %283 = vrot.lane.b32.xlu0 %v179_v1, %s694_s22 }
  0x31   : > { %309 = vrot.lane.b32.xlu1 %v204_v0, %s695_s23  ;;  %307 = vrot.lane.b32.xlu0 %v207_v2, %s695_s23 }
  0x35   : > { %333 = vrot.lane.b32.xlu1 %v232_v4, %s696_s24  ;;  %331 = vrot.lane.b32.xlu0 %v179_v1, %s696_s24 }
  0x39   : > { %281 = vrot.lane.b32.xlu1 %v183_v5, %s694_s22  ;;  %257 = vrot.lane.b32.xlu0 %v179_v1, %s693_s21 }
  0x3d   : > { %329 = vrot.lane.b32.xlu1 %v183_v5, %s696_s24  ;;  %305 = vrot.lane.b32.xlu0 %v179_v1, %s695_s23 }
  0x41   : > { %287 = vrot.lane.b32.xlu1 %v204_v0, %s694_s22  ;;  %263 = vrot.lane.b32.xlu0 %v208_v6, %s693_s21 }
  0x45   : > { %335 = vrot.lane.b32.xlu1 %v204_v0, %s696_s24  ;;  %311 = vrot.lane.b32.xlu0 %v208_v6, %s695_s23 }
  0x49   : > { %357 = vrot.lane.b32.xlu1 %v204_v0, %s698_s25  ;;  %355 = vrot.lane.b32.xlu0 %v207_v2, %s698_s25 }
  0x4d   : > { %359 = vrot.lane.b32.xlu1 %v208_v6, %s698_s25  ;;  %353 = vrot.lane.b32.xlu0 %v179_v1, %s698_s25 }
  0x51   : > { %390 = vperm.xlu0 %676, %v387_v10  }
  0x83   : > { %v214_v11 = vpop.permute.xlu1 %213  ;;  %v188_v12 = vpop.permute.xlu0 %187 }
  0x87   : > { %v212_v13 = vpop.permute.xlu1 %211  ;;  %v236_v14 = vpop.permute.xlu0 %235 }
  0x88   : > { %v219_v15 = vsel %vm217_vm1, %v212_v13, %v214_v11 }
  0x89   : > { %225 = vst [vmem:[#allocation2 + $0x20] sm:$0xf] %v219_v15 }
  0x8b   : > { %v238_v16 = vpop.permute.xlu1 %237  ;;  %v190_v17 = vpop.permute.xlu0 %189 }
  0x8c   : > { %v243_v18 = vsel %vm241_vm2, %v236_v14, %v238_v16  ;;  %v195_v19 = vsel %vm193_vm3, %v188_v12, %v190_v17 }
  0x8d   : > { %249 = vst [vmem:[#allocation2 + $0x20] sm:$0xf0] %v243_v18  ;;  %201 = vst [vmem:[#allocation2 + $0x8] sm:$0xf0] %v195_v19 }
  0x8f   : > { %v210_v20 = vpop.permute.xlu1 %209  ;;  %v186_v21 = vpop.permute.xlu0 %185 }
  0x90   : > { %v218_v22 = vsel %vm217_vm1, %v210_v20, %v212_v13  ;;  %v194_v23 = vsel %vm193_vm3, %v186_v21, %v188_v12 }
  0x91   : > { %224 = vst [vmem:[#allocation2 + $0x18] sm:$0xf] %v218_v22  ;;  %200 = vst [vmem:[#allocation2] sm:$0xf0] %v194_v23  ;;  %v371_v23 = vld [vmem:[%s772_s1] sm:$0xff] }
  0x93   : > { %v192_v24 = vpop.permute.xlu1 %191  ;;  %v234_v25 = vpop.permute.xlu0 %233 }
  0x94   : > { %v196_v26 = vsel %vm193_vm3, %v190_v17, %v192_v24  ;;  %v242_v27 = vsel %vm241_vm2, %v234_v25, %v236_v14  ;;  %v373_v28 = vld [vmem:[#allocation2 + $0x8] sm:$0xff]  ;;  %v376_v29 = vld [vmem:[#allocation2 + $0x20] sm:$0xff] }
  0x95   : > { %202 = vst [vmem:[#allocation2 + $0x10] sm:$0xf0] %v196_v26  ;;  %248 = vst [vmem:[#allocation2 + $0x18] sm:$0xf0] %v242_v27  ;;  %v641_v30 = vpack.c.bf16 %v376_v29, %v373_v28 }
  0x97   : > { %v240_v31 = vpop.permute.xlu1 %239  ;;  %v216_v32 = vpop.permute.xlu0 %215  ;;  %642 = vmatprep.subr.bf16.mxu0 %v641_v30 }
  0x98   : > { %v244_v33 = vsel %vm241_vm2, %v238_v16, %v240_v31  ;;  %v220_v34 = vsel %vm217_vm1, %v214_v11, %v216_v32  ;;  %v372_v38 = vld [vmem:[#allocation2] sm:$0xff] }
  0x99   : > { %250 = vst [vmem:[#allocation2 + $0x28] sm:$0xf0] %v244_v33  ;;  %226 = vst [vmem:[#allocation2 + $0x28] sm:$0xf] %v220_v34 }
  0x9b   : > { %v262_v35 = vpop.permute.xlu1 %261  ;;  %v260_v36 = vpop.permute.xlu0 %259 }
  0x9c   : > { %v267_v37 = vsel %vm265_vm4, %v260_v36, %v262_v35  ;;  %v375_v39 = vld [vmem:[#allocation2 + $0x18] sm:$0xff]  ;;  %v374_v44 = vld [vmem:[#allocation2 + $0x10] sm:$0xff] }
  0x9d   : > { %273 = vst [vmem:[#allocation2 + $0x38] sm:$0xf] %v267_v37  ;;  %v643_v40 = vpack.c.bf16 %v375_v39, %v372_v38 }
  0x9f   : > { %v286_v41 = vpop.permute.xlu1 %285  ;;  %v284_v42 = vpop.permute.xlu0 %283  ;;  %644 = vmatpush1.bf16.msra.mxu0 %v643_v40 }
  0xa0   : > { %v291_v43 = vsel %vm289_vm5, %v284_v42, %v286_v41  ;;  %v377_v45 = vld [vmem:[#allocation2 + $0x28] sm:$0xff] }
  0xa1   : > { %297 = vst [vmem:[#allocation2 + $0x38] sm:$0xf0] %v291_v43  ;;  %v650_v46 = vpack.c.bf16 %v377_v45, %v374_v44 }
  0xa3   : > { %v310_v47 = vpop.permute.xlu1 %309  ;;  %v308_v48 = vpop.permute.xlu0 %307  ;;  %651 = vmatpush3.bf16.msra.mxu1 %v650_v46 }
  0xa4   : > { %v315_v49 = vsel %vm313_vm6, %v308_v48, %v310_v47  ;;  %652 = vmatprep.subr.bf16.mxu1 %v692_v7 }
  0xa5   : > { %321 = vst [vmem:[#allocation2 + $0x50] sm:$0xf] %v315_v49 }
  0xa7   : > { %v334_v50 = vpop.permute.xlu1 %333  ;;  %v332_v51 = vpop.permute.xlu0 %331 }
  0xa8   : > { %v339_v52 = vsel %vm337_vm7, %v332_v51, %v334_v50  ;;  %v379_v61 = vld [vmem:[#allocation2 + $0x38] sm:$0xff] }
  0xa9   : > { %345 = vst [vmem:[#allocation2 + $0x50] sm:$0xf0] %v339_v52 }
  0xab   : > { %v282_v53 = vpop.permute.xlu1 %281  ;;  %v258_v54 = vpop.permute.xlu0 %257 }
  0xac   : > { %v290_v55 = vsel %vm289_vm5, %v282_v53, %v284_v42  ;;  %v266_v56 = vsel %vm265_vm4, %v258_v54, %v260_v36 }
  0xad   : > { %296 = vst [vmem:[#allocation2 + $0x30] sm:$0xf0] %v290_v55  ;;  %272 = vst [vmem:[#allocation2 + $0x30] sm:$0xf] %v266_v56 }
  0xaf   : > { %v330_v57 = vpop.permute.xlu1 %329  ;;  %v306_v58 = vpop.permute.xlu0 %305 }
  0xb0   : > { %v338_v59 = vsel %vm337_vm7, %v330_v57, %v332_v51  ;;  %v314_v60 = vsel %vm313_vm6, %v306_v58, %v308_v48  ;;  %v382_v62 = vld [vmem:[#allocation2 + $0x50] sm:$0xff] }
  0xb1   : > { %344 = vst [vmem:[#allocation2 + $0x48] sm:$0xf0] %v338_v59  ;;  %320 = vst [vmem:[#allocation2 + $0x48] sm:$0xf] %v314_v60  ;;  %v645_v63 = vpack.c.bf16 %v382_v62, %v379_v61 }
  0xb3   : > { %v288_v0 = vpop.permute.xlu1 %287  ;;  %v264_v1 = vpop.permute.xlu0 %263  ;;  %646 = vmatprep.subr.bf16.mxu0 %v645_v63 }
  0xb4   : > { %v292_v2 = vsel %vm289_vm5, %v286_v41, %v288_v0  ;;  %v268_v3 = vsel %vm265_vm4, %v262_v35, %v264_v1  ;;  %v378_v9 = vld [vmem:[#allocation2 + $0x30] sm:$0xff] }
  0xb5   : > { %298 = vst [vmem:[#allocation2 + $0x40] sm:$0xf0] %v292_v2  ;;  %274 = vst [vmem:[#allocation2 + $0x40] sm:$0xf] %v268_v3 }
  0xb7   : > { %v336_v4 = vpop.permute.xlu1 %335  ;;  %v312_v5 = vpop.permute.xlu0 %311 }
  0xb8   : > { %v340_v6 = vsel %vm337_vm7, %v334_v50, %v336_v4  ;;  %v316_v7 = vsel %vm313_vm6, %v310_v47, %v312_v5  ;;  %v381_v10 = vld [vmem:[#allocation2 + $0x48] sm:$0xff] }
  0xb9   : > { %346 = vst [vmem:[#allocation2 + $0x58] sm:$0xf0] %v340_v6  ;;  %322 = vst [vmem:[#allocation2 + $0x58] sm:$0xf] %v316_v7  ;;  %v647_v11 = vpack.c.bf16 %v381_v10, %v378_v9 }
  0xbb   : > { %v358_v12 = vpop.permute.xlu1 %357  ;;  %v356_v13 = vpop.permute.xlu0 %355  ;;  %648 = vmatpush1.bf16.msra.mxu0 %v647_v11 }
  0xbc   : > { %v363_v14 = vsel %vm361_vm8, %v356_v13, %v358_v12  ;;  %v380_v19 = vld [vmem:[#allocation2 + $0x40] sm:$0xff] }
  0xbd   : > { %369 = vst [vmem:[#allocation2 + $0x68] sm:$0xf] %v363_v14 }
  0xbf   : > { %v360_v15 = vpop.permute.xlu1 %359  ;;  %v354_v16 = vpop.permute.xlu0 %353 }
  0xc0   : > { %v364_v17 = vsel %vm361_vm8, %v358_v12, %v360_v15  ;;  %v362_v18 = vsel %vm361_vm8, %v354_v16, %v356_v13  ;;  %v383_v20 = vld [vmem:[#allocation2 + $0x58] sm:$0xff] }
  0xc1   : > { %370 = vst [vmem:[#allocation2 + $0x70] sm:$0xf] %v364_v17  ;;  %368 = vst [vmem:[#allocation2 + $0x60] sm:$0xf] %v362_v18  ;;  %v653_v21 = vpack.c.bf16 %v383_v20, %v380_v19 }
  0xc3   : > { %654 = vmatpush3.bf16.msra.mxu1 %v653_v21 }
  0xc4   : > { %v385_v22 = vld [vmem:[#allocation2 + $0x68] sm:$0xf]  ;;  %636 = vmatprep.subr.mxu1 %v697_v8 }
  0xc5   : > { %614 = vmatprep.subr.msk.mxu0 %vm397_vm9, %v385_v22 }
  0xc8   : > { %v384_v24 = vld [vmem:[#allocation2 + $0x60] sm:$0xf]  ;;  %v386_v25 = vld [vmem:[#allocation2 + $0x70] sm:$0xf] }
  0xc9   : > { %615 = vmatpush1.msk.msra.mxu0 %vm397_vm9, %v384_v24  ;;  %637 = vmatpush3.msk.msra.mxu1 %vm397_vm9, %v386_v25 }
  0xca   : > { %616 = vmatmul.mubr.msk.f32.vlgmr.msra.gmra.mrb[0].mxu0 %vm393_vm10, %v371_v23  ;;  %639 = vmatmul.mubr.msk.f32.vlgmr.msra.gmra.mrb[0].mxu1 %vm393_vm10, %v371_v23 }
  0xd0   : > { %v391_v26 = vpop.permute.xlu0 %390 }
 0x19d   : > { %v473_v27 = vpop.f32.mrb[0].mxu0  ;;  %v544_v8 = vpop.f32.mrb[0].mxu1 }
 0x19e   : > { %v474_v28 = vadd.f32 %v473_v27, %v391_v26  ;;  %v545_v29 = vadd.f32 %v544_v8, %v391_v26  ;;  %v475_v30 = vpop.f32.mrb[1].mxu0  ;;  %v640_v31 = vpop.f32.mrb[1].mxu1 }
 0x19f   : > { %v476_v32 = vadd.f32 %v475_v30, %v391_v26 }
 0x1a0   : > { %548 = vst [vmem:[%s170_s6] sm:$0xff] %v474_v28  ;;  %550 = vst [vmem:[%s170_s6 + $0x10] sm:$0xff] %v545_v29 }
 0x1a1   : > { %549 = vst [vmem:[%s170_s6 + $0x8] sm:$0xff] %v476_v32 }
 0x1a2 PF: > { %s13_s12 = sadd.s32 1, %s687_s12  }
 0x1a3   : > { %p10_p4 = scmp.ge.s32.totalorder %s13_s12, 4  }
 0x1a5   :  { %12 = sbr.rel (!%p10_p4) target bundleno = 1 (0x1), region = 62 }

</bundles_post_ra>
